<compile_context>
chip_gen: v6e
topology: v6e:2x2x1
jax: 0.10.0
libtpu: 0.0.40
codegen_flags: <defaults>
</compile_context>

<pallas_src>
import functools

import jax
import jax.numpy as jnp
import numpy as np
from jax import lax
from jax.experimental import pallas as pl
from jax.experimental.pallas import tpu as pltpu

STATE_DIM = 486          # torch.split(state, [330, 156], dim=-1) is hard-coded
K_PAD = 512              # contraction dim padded to a clean multiple of 128/256
ACTOR_IN = 330
ACTION_DIM = 32
LANE = 128               # lane-padded width of layer-4 output / mask slab
OUT_LANES = 8            # narrow output slab: lane0=logp, lane1=value, lane2=entropy
BATCH = 8
NEG_INF = -100000000.0   # same constant CategoricalMasked uses


def _round_up(x, m):
    return ((x + m - 1) // m) * m


def _choose_tile(batch, batch_tile):
    # tile must be a multiple of 32 (int8 mask slab sublane tiling, bf16 state
    # sublane tiling); cap at ~ceil(B/2) so big batches give >=2 grid steps and
    # v7x can shard the "parallel" batch axis across both TensorCores.
    half = _round_up(max(1, -(-batch // 2)), 32)
    return max(32, min(batch_tile, half))


# ----------------------------------------------------------------------------
# Kernel: fused actor+critic MLP + masked categorical statistics.
# Weight layout (built by pack_params, all bf16 except the bias slab):
#   W1 (512, 256): cols 0..127 = actor l1 (rows 330..511 zero),
#                  cols 128..255 = critic l1 (rows 486..511 zero)
#   W2 (256, 128): blockdiag(aw2 (128,64), cw2 (128,64))
#   W3 (128, 128): blockdiag(aw3 (64,64),  cw3 (64,64))
#   W4 (128, 128): rows 0..63 x cols 0..31 = aw4, rows 64..127 x col 32 = cw4
#   B  (8, 256) f32: row0=[ab1|cb1], row1=[ab2|cb2|0], row2=[ab3|cb3|0],
#                    row3=[ab4| cb4 @ col 32 |0]
# Mask/action slab (int8, 128 lanes): bit0 = legal-action mask, bit1 = one-hot
# of the evaluated action (lanes 0..31), padded lanes/rows are 0.
# ----------------------------------------------------------------------------
def _actor_critic_kernel(state_ref, ma_ref,
                         w1_ref, w2_ref, w3_ref, w4_ref, bias_ref,
                         out_ref):
    x = state_ref[...]                               # (tB, 512) bf16
    b = bias_ref[...]                                # (8, 256)  f32
    b1 = b[0:1, :]                                   # (1, 256)
    b2 = b[1:2, :LANE]                               # (1, 128)
    b3 = b[2:3, :LANE]
    b4 = b[3:4, :LANE]

    # fused actor+critic MLP: bf16 operands on the MXU, f32 accumulate + tanh
    h = jnp.tanh(jnp.dot(x, w1_ref[...], preferred_element_type=jnp.float32) + b1)
    h = jnp.tanh(jnp.dot(h.astype(jnp.bfloat16), w2_ref[...],
                         preferred_element_type=jnp.float32) + b2)
    h = jnp.tanh(jnp.dot(h.astype(jnp.bfloat16), w3_ref[...],
                         preferred_element_type=jnp.float32) + b3)
    pre = jnp.dot(h.astype(jnp.bfloat16), w4_ref[...],
                  preferred_element_type=jnp.float32) + b4               # (tB, 128) f32

    tB = pre.shape[0]
    lane = lax.broadcasted_iota(jnp.int32, (tB, LANE), 1)

    # critic value lives in lane ACTION_DIM (== 32): static slice, no reduction
    value = pre[:, ACTION_DIM:ACTION_DIM + 1]                            # (tB, 1)

    # nn.Softmax(dim=-1) over the 32 action lanes only (padded lanes masked)
    is_act = lane < ACTION_DIM
    pre_a = jnp.where(is_act, pre, jnp.float32(NEG_INF))
    pmax = jnp.max(pre_a, axis=-1, keepdims=True)
    pexp = jnp.where(is_act, jnp.exp(pre_a - pmax), 0.0)
    denom = jnp.sum(pexp, axis=-1, keepdims=True)
    action_probs = pexp * pl.reciprocal(denom, approx=True)              # (tB, 128)

    ma = ma_ref[...].astype(jnp.int32)                                   # (tB, 128)
    mask = (ma & 1) != 0                                                 # legal actions
    onehot = (ma & 2) != 0                                               # evaluated action

    # NOTE: the torch module deliberately feeds softmax *probabilities* as the
    # "logits" of CategoricalMasked; reproduced here on purpose.
    logits = jnp.where(mask, action_probs, jnp.float32(NEG_INF))
    lmax = jnp.max(logits, axis=-1, keepdims=True)
    lexp = jnp.where(is_act, jnp.exp(logits - lmax), 0.0)                # 32-cat lse
    lse = jnp.log(jnp.sum(lexp, axis=-1, keepdims=True)) + lmax
    norm_logits = logits - lse                                           # Categorical.logits
    probs = jnp.exp(norm_logits)                                         # Categorical.probs

    # log_prob(action) via the one-hot bit (no dynamic gather needed)
    logp = jnp.sum(jnp.where(onehot, norm_logits, 0.0), axis=-1, keepdims=True)

    # masked entropy: -sum(where(mask, logits*probs, 0))
    ent = -jnp.sum(jnp.where(mask, norm_logits * probs, 0.0), axis=-1, keepdims=True)

    # narrow output slab: col0=logp, col1=value, col2=entropy, rest 0
    lane8 = lax.broadcasted_iota(jnp.int32, (tB, OUT_LANES), 1)
    out_ref[...] = jnp.where(lane8 == 0, logp,
                   jnp.where(lane8 == 1, value,
                   jnp.where(lane8 == 2, ent, 0.0)))


# ----------------------------------------------------------------------------
# Wrapper
# ----------------------------------------------------------------------------
@functools.partial(jax.jit, static_argnames=("batch_tile",))
def actor_critic_evaluate(state, action, masks, packed_params, batch_tile=1024):
    """Returns (action_logprobs (B,), state_values (B,1), dist_entropy (B,))."""
    w1, w2, w3, w4, bias = packed_params
    B = state.shape[0]
    A = masks.shape[1]

    tile = _choose_tile(B, batch_tile)
    Bp = _round_up(B, tile)

    # bf16 cast + batch/K padding fused into a single pass (the cast to bf16 is
    # needed for the MXU anyway, so no extra full-array padding copy).
    state_p = (jnp.zeros((Bp, K_PAD), jnp.bfloat16)
               .at[:B, :STATE_DIM].set(state.astype(jnp.bfloat16)))

    # one int8 slab: bit0 = legal mask, bit1 = one-hot of the evaluated action
    onehot = (jnp.arange(A, dtype=jnp.int32)[None, :]
              == action.astype(jnp.int32)[:, None])
    slab = (masks != 0).astype(jnp.int8) | (onehot.astype(jnp.int8) << 1)
    ma_p = jnp.zeros((Bp, LANE), jnp.int8).at[:B, :A].set(slab)

    out = pl.pallas_call(
        _actor_critic_kernel,
        out_shape=jax.ShapeDtypeStruct((Bp, OUT_LANES), jnp.float32),
        grid_spec=pltpu.PrefetchScalarGridSpec(
            num_scalar_prefetch=0,
            grid=(Bp // tile,),
            in_specs=[
                pl.BlockSpec((tile, K_PAD), lambda i: (i, 0)),   # state tile (bf16)
                pl.BlockSpec((tile, LANE), lambda i: (i, 0)),    # mask+action slab (int8)
                pl.BlockSpec(w1.shape, lambda i: (0, 0)),        # resident weights
                pl.BlockSpec(w2.shape, lambda i: (0, 0)),
                pl.BlockSpec(w3.shape, lambda i: (0, 0)),
                pl.BlockSpec(w4.shape, lambda i: (0, 0)),
                pl.BlockSpec(bias.shape, lambda i: (0, 0)),
            ],
            out_specs=pl.BlockSpec((tile, OUT_LANES), lambda i: (i, 0)),
        ),
        compiler_params=pltpu.CompilerParams(
            dimension_semantics=("parallel",),          # shard batch over TCs (v7x)
            vmem_limit_bytes=48 * 1024 * 1024),         # under v7x 64 MiB physical
    )(state_p, ma_p, w1, w2, w3, w4, bias)

    return out[:B, 0], out[:B, 1:2], out[:B, 2]


# ----------------------------------------------------------------------------
# Parameter construction / packing
# ----------------------------------------------------------------------------
def _init_linear(key, fan_in, fan_out):
    kw, kb = jax.random.split(key)
    bound = 1.0 / jnp.sqrt(jnp.float32(fan_in))
    w = jax.random.uniform(kw, (fan_in, fan_out), jnp.float32, -bound, bound)
    b = jax.random.uniform(kb, (1, fan_out), jnp.float32, -bound, bound)
    return w, b


def init_params(key, state_dim=STATE_DIM, action_dim=ACTION_DIM):
    keys = jax.random.split(key, 8)
    aw1, ab1 = _init_linear(keys[0], state_dim - 156, 128)     # actor
    aw2, ab2 = _init_linear(keys[1], 128, 64)
    aw3, ab3 = _init_linear(keys[2], 64, 64)
    aw4, ab4 = _init_linear(keys[3], 64, action_dim)
    cw1, cb1 = _init_linear(keys[4], state_dim, 128)           # critic
    cw2, cb2 = _init_linear(keys[5], 128, 64)
    cw3, cb3 = _init_linear(keys[6], 64, 64)
    cw4, cb4 = _init_linear(keys[7], 64, 1)
    return (aw1, ab1, aw2, ab2, aw3, ab3, aw4, ab4,
            cw1, cb1, cw2, cb2, cw3, cb3, cw4, cb4)


def pack_params(params):
    """Pack 16 torch-style tensors into 4 bf16 fused weight slabs + 1 f32 bias slab."""
    (aw1, ab1, aw2, ab2, aw3, ab3, aw4, ab4,
     cw1, cb1, cw2, cb2, cw3, cb3, cw4, cb4) = params

    W1 = (jnp.zeros((K_PAD, 256), jnp.float32)
          .at[:ACTOR_IN, :128].set(aw1)
          .at[:STATE_DIM, 128:].set(cw1)).astype(jnp.bfloat16)           # (512, 256)

    W2 = (jnp.zeros((256, 128), jnp.float32)
          .at[:128, :64].set(aw2).at[128:, 64:].set(cw2)).astype(jnp.bfloat16)
    W3 = (jnp.zeros((128, 128), jnp.float32)
          .at[:64, :64].set(aw3).at[64:, 64:].set(cw3)).astype(jnp.bfloat16)
    W4 = (jnp.zeros((128, LANE), jnp.float32)
          .at[:64, :ACTION_DIM].set(aw4)
          .at[64:, ACTION_DIM:ACTION_DIM + 1].set(cw4)).astype(jnp.bfloat16)

    Bslab = (jnp.zeros((8, 256), jnp.float32)
             .at[0, :128].set(ab1[0]).at[0, 128:].set(cb1[0])
             .at[1, :64].set(ab2[0]).at[1, 64:128].set(cb2[0])
             .at[2, :64].set(ab3[0]).at[2, 64:128].set(cb3[0])
             .at[3, :ACTION_DIM].set(ab4[0])
             .at[3, ACTION_DIM:ACTION_DIM + 1].set(cb4[0]))              # (8, 256) f32

    return (W1, W2, W3, W4, Bslab)


# ----------------------------------------------------------------------------
# Pure-JAX f32 reference of the torch forward semantics (correctness check)
# ----------------------------------------------------------------------------
def reference_evaluate(state, action, masks, params):
    (aw1, ab1, aw2, ab2, aw3, ab3, aw4, ab4,
     cw1, cb1, cw2, cb2, cw3, cb3, cw4, cb4) = params
    s1 = state[:, :ACTOR_IN]
    h = jnp.tanh(s1 @ aw1 + ab1)
    h = jnp.tanh(h @ aw2 + ab2)
    h = jnp.tanh(h @ aw3 + ab3)
    action_probs = jax.nn.softmax(h @ aw4 + ab4, axis=-1)
    maskb = masks.astype(bool)
    logits = jnp.where(maskb, action_probs, jnp.float32(NEG_INF))
    norm = logits - jax.scipy.special.logsumexp(logits, axis=-1, keepdims=True)
    probs = jnp.exp(norm)
    logp = jnp.take_along_axis(norm, action[:, None].astype(jnp.int32), axis=-1)[:, 0]
    ent = -jnp.sum(jnp.where(maskb, norm * probs, 0.0), axis=-1)
    c = jnp.tanh(state @ cw1 + cb1)
    c = jnp.tanh(c @ cw2 + cb2)
    c = jnp.tanh(c @ cw3 + cb3)
    value = c @ cw4 + cb4
    return logp, value, ent


if __name__ == "__main__":
    key = jax.random.PRNGKey(0)
    k_params, k_state, k_mask, k_act = jax.random.split(key, 4)

    raw_params = init_params(k_params)
    packed = pack_params(raw_params)

    state = jax.random.normal(k_state, (BATCH, STATE_DIM), jnp.float32)
    masks = (jax.random.uniform(k_mask, (BATCH, ACTION_DIM)) > 0.3).astype(jnp.int32)
    masks = masks.at[:, 0].set(1)      # guarantee at least one legal action per row
    action = jax.random.randint(k_act, (BATCH,), 0, ACTION_DIM, dtype=jnp.int32)

    logp, value, entropy = actor_critic_evaluate(state, action, masks, packed)
    jax.block_until_ready((logp, value, entropy))

    assert logp.shape == (BATCH,)
    assert value.shape == (BATCH, 1)
    assert entropy.shape == (BATCH,)

    ref_logp, ref_value, ref_ent = reference_evaluate(state, action, masks, raw_params)
    # bf16 matmul operands -> ~1% worst-case deviation from the f32 reference
    np.testing.assert_allclose(np.asarray(logp), np.asarray(ref_logp), rtol=2e-2, atol=2e-2)
    np.testing.assert_allclose(np.asarray(value), np.asarray(ref_value), rtol=2e-2, atol=2e-2)
    np.testing.assert_allclose(np.asarray(entropy), np.asarray(ref_ent), rtol=2e-2, atol=2e-2)

    print("KERNEL_OK")
</pallas_src>

<mosaic_0001>
module attributes {stable_mosaic.version = 11 : i64} {
  func.func @_actor_critic_kernel(%arg0: i32, %arg1: memref<32x512xbf16, #tpu.memory_space<vmem>>, %arg2: memref<32x128xi8, #tpu.memory_space<vmem>>, %arg3: memref<512x256xbf16, #tpu.memory_space<vmem>>, %arg4: memref<256x128xbf16, #tpu.memory_space<vmem>>, %arg5: memref<128x128xbf16, #tpu.memory_space<vmem>>, %arg6: memref<128x128xbf16, #tpu.memory_space<vmem>>, %arg7: memref<8x256xf32, #tpu.memory_space<vmem>>, %arg8: memref<32x8xf32, #tpu.memory_space<vmem>>) attributes {dimension_semantics = [#tpu.dimension_semantics<parallel>], iteration_bounds = array<i64: 1>, scalar_prefetch = 0 : i64, scratch_operands = 0 : i64, tpu.core_type = #tpu.core_type<tc>, window_params = [{transform_indices = @transform_0, window_bounds = array<i64: 32, 512>}, {transform_indices = @transform_1, window_bounds = array<i64: 32, 128>}, {pipeline_mode = #tpu.pipeline_mode<synchronous>, transform_indices = @transform_2, window_bounds = array<i64: 512, 256>}, {pipeline_mode = #tpu.pipeline_mode<synchronous>, transform_indices = @transform_3, window_bounds = array<i64: 256, 128>}, {pipeline_mode = #tpu.pipeline_mode<synchronous>, transform_indices = @transform_4, window_bounds = array<i64: 128, 128>}, {pipeline_mode = #tpu.pipeline_mode<synchronous>, transform_indices = @transform_5, window_bounds = array<i64: 128, 128>}, {pipeline_mode = #tpu.pipeline_mode<synchronous>, transform_indices = @transform_6, window_bounds = array<i64: 8, 256>}, {transform_indices = @transform_7, window_bounds = array<i64: 32, 8>}]} {
    %c0 = arith.constant 0 : index
    %c0_0 = arith.constant 0 : index
    %0 = vector.load %arg1[%c0, %c0_0] : memref<32x512xbf16, #tpu.memory_space<vmem>>, vector<32x512xbf16>
    %c0_1 = arith.constant 0 : index
    %c0_2 = arith.constant 0 : index
    %1 = vector.load %arg7[%c0_1, %c0_2] : memref<8x256xf32, #tpu.memory_space<vmem>>, vector<8x256xf32>
    %2 = vector.extract_strided_slice %1 {offsets = [0, 0], sizes = [1, 256], strides = [1, 1]} : vector<8x256xf32> to vector<1x256xf32>
    %3 = vector.extract_strided_slice %1 {offsets = [1, 0], sizes = [1, 128], strides = [1, 1]} : vector<8x256xf32> to vector<1x128xf32>
    %4 = vector.extract_strided_slice %1 {offsets = [2, 0], sizes = [1, 128], strides = [1, 1]} : vector<8x256xf32> to vector<1x128xf32>
    %5 = vector.extract_strided_slice %1 {offsets = [3, 0], sizes = [1, 128], strides = [1, 1]} : vector<8x256xf32> to vector<1x128xf32>
    %c0_3 = arith.constant 0 : index
    %c0_4 = arith.constant 0 : index
    %6 = vector.load %arg3[%c0_3, %c0_4] : memref<512x256xbf16, #tpu.memory_space<vmem>>, vector<512x256xbf16>
    %cst = arith.constant dense<0.000000e+00> : vector<32x256xf32>
    %7 = tpu.matmul %0, %6, %cst {dimension_numbers = #tpu.dot_dimension_numbers<[1], [0], [0], [1], [0, 0, 1, 1], [], []>} : vector<32x512xbf16>, vector<512x256xbf16>, vector<32x256xf32> -> vector<32x256xf32>
    %8 = vector.broadcast %2 : vector<1x256xf32> to vector<32x256xf32>
    %9 = arith.addf %7, %8 : vector<32x256xf32>
    %10 = math.tanh %9 : vector<32x256xf32>
    %11 = arith.truncf %10 : vector<32x256xf32> to vector<32x256xbf16>
    %c0_5 = arith.constant 0 : index
    %c0_6 = arith.constant 0 : index
    %12 = vector.load %arg4[%c0_5, %c0_6] : memref<256x128xbf16, #tpu.memory_space<vmem>>, vector<256x128xbf16>
    %cst_7 = arith.constant dense<0.000000e+00> : vector<32x128xf32>
    %13 = tpu.matmul %11, %12, %cst_7 {dimension_numbers = #tpu.dot_dimension_numbers<[1], [0], [0], [1], [0, 0, 1, 1], [], []>} : vector<32x256xbf16>, vector<256x128xbf16>, vector<32x128xf32> -> vector<32x128xf32>
    %14 = vector.broadcast %3 : vector<1x128xf32> to vector<32x128xf32>
    %15 = arith.addf %13, %14 : vector<32x128xf32>
    %16 = math.tanh %15 : vector<32x128xf32>
    %17 = arith.truncf %16 : vector<32x128xf32> to vector<32x128xbf16>
    %c0_8 = arith.constant 0 : index
    %c0_9 = arith.constant 0 : index
    %18 = vector.load %arg5[%c0_8, %c0_9] : memref<128x128xbf16, #tpu.memory_space<vmem>>, vector<128x128xbf16>
    %cst_10 = arith.constant dense<0.000000e+00> : vector<32x128xf32>
    %19 = tpu.matmul %17, %18, %cst_10 {dimension_numbers = #tpu.dot_dimension_numbers<[1], [0], [0], [1], [0, 0, 1, 1], [], []>} : vector<32x128xbf16>, vector<128x128xbf16>, vector<32x128xf32> -> vector<32x128xf32>
    %20 = vector.broadcast %4 : vector<1x128xf32> to vector<32x128xf32>
    %21 = arith.addf %19, %20 : vector<32x128xf32>
    %22 = math.tanh %21 : vector<32x128xf32>
    %23 = arith.truncf %22 : vector<32x128xf32> to vector<32x128xbf16>
    %c0_11 = arith.constant 0 : index
    %c0_12 = arith.constant 0 : index
    %24 = vector.load %arg6[%c0_11, %c0_12] : memref<128x128xbf16, #tpu.memory_space<vmem>>, vector<128x128xbf16>
    %cst_13 = arith.constant dense<0.000000e+00> : vector<32x128xf32>
    %25 = tpu.matmul %23, %24, %cst_13 {dimension_numbers = #tpu.dot_dimension_numbers<[1], [0], [0], [1], [0, 0, 1, 1], [], []>} : vector<32x128xbf16>, vector<128x128xbf16>, vector<32x128xf32> -> vector<32x128xf32>
    %26 = vector.broadcast %5 : vector<1x128xf32> to vector<32x128xf32>
    %27 = arith.addf %25, %26 : vector<32x128xf32>
    %28 = tpu.iota {dimensions = array<i32: 1>} : vector<32x128xi32>
    %29 = vector.extract_strided_slice %27 {offsets = [0, 32], sizes = [32, 1], strides = [1, 1]} : vector<32x128xf32> to vector<32x1xf32>
    %c32_i32 = arith.constant 32 : i32
    %30 = vector.broadcast %c32_i32 : i32 to vector<32x128xi32>
    %31 = arith.cmpi slt, %28, %30 : vector<32x128xi32>
    %cst_14 = arith.constant -1.000000e+08 : f32
    %32 = vector.broadcast %cst_14 : f32 to vector<32x128xf32>
    %33 = arith.select %31, %27, %32 : vector<32x128xi1>, vector<32x128xf32>
    %cst_15 = arith.constant dense<0xFF800000> : vector<32xf32>
    %34 = vector.multi_reduction <maximumf>, %33, %cst_15 [1] : vector<32x128xf32> to vector<32xf32>
    %35 = vector.shape_cast %34 : vector<32xf32> to vector<32x1xf32>
    %36 = vector.broadcast %35 : vector<32x1xf32> to vector<32x128xf32>
    %37 = arith.subf %33, %36 : vector<32x128xf32>
    %38 = math.exp %37 : vector<32x128xf32>
    %cst_16 = arith.constant 0.000000e+00 : f32
    %39 = vector.broadcast %cst_16 : f32 to vector<32x128xf32>
    %40 = arith.select %31, %38, %39 : vector<32x128xi1>, vector<32x128xf32>
    %cst_17 = arith.constant dense<0.000000e+00> : vector<32xf32>
    %41 = vector.multi_reduction <add>, %40, %cst_17 [1] : vector<32x128xf32> to vector<32xf32>
    %42 = vector.shape_cast %41 : vector<32xf32> to vector<32x1xf32>
    %43 = tpu.reciprocal %42 {approx = true} : vector<32x1xf32> -> vector<32x1xf32>
    %44 = vector.broadcast %43 : vector<32x1xf32> to vector<32x128xf32>
    %45 = arith.mulf %40, %44 : vector<32x128xf32>
    %c0_18 = arith.constant 0 : index
    %c0_19 = arith.constant 0 : index
    %46 = vector.load %arg2[%c0_18, %c0_19] : memref<32x128xi8, #tpu.memory_space<vmem>>, vector<32x128xi8>
    %47 = arith.extsi %46 : vector<32x128xi8> to vector<32x128xi32>
    %c1_i32 = arith.constant 1 : i32
    %48 = vector.broadcast %c1_i32 : i32 to vector<32x128xi32>
    %49 = arith.andi %47, %48 : vector<32x128xi32>
    %c0_i32 = arith.constant 0 : i32
    %50 = vector.broadcast %c0_i32 : i32 to vector<32x128xi32>
    %51 = arith.cmpi ne, %49, %50 : vector<32x128xi32>
    %c2_i32 = arith.constant 2 : i32
    %52 = vector.broadcast %c2_i32 : i32 to vector<32x128xi32>
    %53 = arith.andi %47, %52 : vector<32x128xi32>
    %c0_i32_20 = arith.constant 0 : i32
    %54 = vector.broadcast %c0_i32_20 : i32 to vector<32x128xi32>
    %55 = arith.cmpi ne, %53, %54 : vector<32x128xi32>
    %cst_21 = arith.constant -1.000000e+08 : f32
    %56 = vector.broadcast %cst_21 : f32 to vector<32x128xf32>
    %57 = arith.select %51, %45, %56 : vector<32x128xi1>, vector<32x128xf32>
    %cst_22 = arith.constant dense<0xFF800000> : vector<32xf32>
    %58 = vector.multi_reduction <maximumf>, %57, %cst_22 [1] : vector<32x128xf32> to vector<32xf32>
    %59 = vector.shape_cast %58 : vector<32xf32> to vector<32x1xf32>
    %60 = vector.broadcast %59 : vector<32x1xf32> to vector<32x128xf32>
    %61 = arith.subf %57, %60 : vector<32x128xf32>
    %62 = math.exp %61 : vector<32x128xf32>
    %cst_23 = arith.constant 0.000000e+00 : f32
    %63 = vector.broadcast %cst_23 : f32 to vector<32x128xf32>
    %64 = arith.select %31, %62, %63 : vector<32x128xi1>, vector<32x128xf32>
    %cst_24 = arith.constant dense<0.000000e+00> : vector<32xf32>
    %65 = vector.multi_reduction <add>, %64, %cst_24 [1] : vector<32x128xf32> to vector<32xf32>
    %66 = vector.shape_cast %65 : vector<32xf32> to vector<32x1xf32>
    %67 = math.log %66 : vector<32x1xf32>
    %68 = arith.addf %67, %59 : vector<32x1xf32>
    %69 = vector.broadcast %68 : vector<32x1xf32> to vector<32x128xf32>
    %70 = arith.subf %57, %69 : vector<32x128xf32>
    %71 = math.exp %70 : vector<32x128xf32>
    %cst_25 = arith.constant 0.000000e+00 : f32
    %72 = vector.broadcast %cst_25 : f32 to vector<32x128xf32>
    %73 = arith.select %55, %70, %72 : vector<32x128xi1>, vector<32x128xf32>
    %cst_26 = arith.constant dense<0.000000e+00> : vector<32xf32>
    %74 = vector.multi_reduction <add>, %73, %cst_26 [1] : vector<32x128xf32> to vector<32xf32>
    %75 = vector.shape_cast %74 : vector<32xf32> to vector<32x1xf32>
    %76 = arith.mulf %70, %71 : vector<32x128xf32>
    %cst_27 = arith.constant 0.000000e+00 : f32
    %77 = vector.broadcast %cst_27 : f32 to vector<32x128xf32>
    %78 = arith.select %51, %76, %77 : vector<32x128xi1>, vector<32x128xf32>
    %cst_28 = arith.constant dense<0.000000e+00> : vector<32xf32>
    %79 = vector.multi_reduction <add>, %78, %cst_28 [1] : vector<32x128xf32> to vector<32xf32>
    %80 = vector.shape_cast %79 : vector<32xf32> to vector<32x1xf32>
    %cst_29 = arith.constant 0.000000e+00 : f32
    %81 = vector.broadcast %cst_29 : f32 to vector<32x1xf32>
    %82 = arith.subf %81, %80 : vector<32x1xf32>
    %83 = tpu.iota {dimensions = array<i32: 1>} : vector<32x8xi32>
    %c0_i32_30 = arith.constant 0 : i32
    %84 = vector.broadcast %c0_i32_30 : i32 to vector<32x8xi32>
    %85 = arith.cmpi eq, %83, %84 : vector<32x8xi32>
    %c1_i32_31 = arith.constant 1 : i32
    %86 = vector.broadcast %c1_i32_31 : i32 to vector<32x8xi32>
    %87 = arith.cmpi eq, %83, %86 : vector<32x8xi32>
    %c2_i32_32 = arith.constant 2 : i32
    %88 = vector.broadcast %c2_i32_32 : i32 to vector<32x8xi32>
    %89 = arith.cmpi eq, %83, %88 : vector<32x8xi32>
    %cst_33 = arith.constant 0.000000e+00 : f32
    %90 = vector.shape_cast %82 : vector<32x1xf32> to vector<32x1xf32>
    %91 = vector.broadcast %90 : vector<32x1xf32> to vector<32x8xf32>
    %92 = vector.broadcast %cst_33 : f32 to vector<32x8xf32>
    %93 = arith.select %89, %91, %92 : vector<32x8xi1>, vector<32x8xf32>
    %94 = vector.shape_cast %29 : vector<32x1xf32> to vector<32x1xf32>
    %95 = vector.broadcast %94 : vector<32x1xf32> to vector<32x8xf32>
    %96 = arith.select %87, %95, %93 : vector<32x8xi1>, vector<32x8xf32>
    %97 = vector.shape_cast %75 : vector<32x1xf32> to vector<32x1xf32>
    %98 = vector.broadcast %97 : vector<32x1xf32> to vector<32x8xf32>
    %99 = arith.select %85, %98, %96 : vector<32x8xi1>, vector<32x8xf32>
    %c0_34 = arith.constant 0 : index
    %c0_35 = arith.constant 0 : index
    %100 = vector.load %arg8[%c0_34, %c0_35] : memref<32x8xf32, #tpu.memory_space<vmem>>, vector<32x8xf32>
    tpu.vector_store %arg8[%c0_34, %c0_35], %99 {strides = array<i32>} : memref<32x8xf32, #tpu.memory_space<vmem>>, vector<32x8xf32>,
    return
  }
  func.func @transform_0(%arg0: i32) -> (i32, i32) {
    %c0_i32 = arith.constant 0 : i32
    %c0_i32_0 = arith.constant 0 : i32
    return %arg0, %c0_i32 : i32, i32
  }
  func.func @transform_1(%arg0: i32) -> (i32, i32) {
    %c0_i32 = arith.constant 0 : i32
    %c0_i32_0 = arith.constant 0 : i32
    return %arg0, %c0_i32 : i32, i32
  }
  func.func @transform_2(%arg0: i32) -> (i32, i32) {
    %c0_i32 = arith.constant 0 : i32
    %c0_i32_0 = arith.constant 0 : i32
    %c0_i32_1 = arith.constant 0 : i32
    return %c0_i32, %c0_i32_0 : i32, i32
  }
  func.func @transform_3(%arg0: i32) -> (i32, i32) {
    %c0_i32 = arith.constant 0 : i32
    %c0_i32_0 = arith.constant 0 : i32
    %c0_i32_1 = arith.constant 0 : i32
    return %c0_i32, %c0_i32_0 : i32, i32
  }
  func.func @transform_4(%arg0: i32) -> (i32, i32) {
    %c0_i32 = arith.constant 0 : i32
    %c0_i32_0 = arith.constant 0 : i32
    %c0_i32_1 = arith.constant 0 : i32
    return %c0_i32, %c0_i32_0 : i32, i32
  }
  func.func @transform_5(%arg0: i32) -> (i32, i32) {
    %c0_i32 = arith.constant 0 : i32
    %c0_i32_0 = arith.constant 0 : i32
    %c0_i32_1 = arith.constant 0 : i32
    return %c0_i32, %c0_i32_0 : i32, i32
  }
  func.func @transform_6(%arg0: i32) -> (i32, i32) {
    %c0_i32 = arith.constant 0 : i32
    %c0_i32_0 = arith.constant 0 : i32
    %c0_i32_1 = arith.constant 0 : i32
    return %c0_i32, %c0_i32_0 : i32, i32
  }
  func.func @transform_7(%arg0: i32) -> (i32, i32) {
    %c0_i32 = arith.constant 0 : i32
    %c0_i32_0 = arith.constant 0 : i32
    return %arg0, %c0_i32 : i32, i32
  }
}

</mosaic_0001>

<bundles_post_ra>
// kernel: actor_critic_evaluate.1
= control target key start
LH: loop header
LB: loop body
LE: loop exit
PB: predicated region body
PF: predicated region fallthrough
CT: control target
= control target key end

     0   :  { %12 = vsyncpa [#allocation3], 0  ;;  %s2042_s0 = inlined_call_operand.vmem [shape: bf16[32,512], index: 0, kind: input, shape index: {}]   ;;  %s2043_s1 = inlined_call_operand.vmem [shape: s8[32,128], index: 1, kind: input, shape index: {}]   ;;  %s2044_s2 = inlined_call_operand.hbm [shape: bf16[512,256], index: 2, kind: input, shape index: {}]   ;;  %s2045_s3 = inlined_call_operand.vmem [shape: bf16[256,128], index: 3, kind: input, shape index: {}]   ;;  %s2046_s4 = inlined_call_operand.hbm [shape: bf16[128,128], index: 4, kind: input, shape index: {}]   ;;  %s2047_s5 = inlined_call_operand.hbm [shape: bf16[128,128], index: 5, kind: input, shape index: {}]   ;;  %s2048_s6 = inlined_call_operand.vmem [shape: f32[8,256], index: 6, kind: input, shape index: {}]   ;;  %s2049_s7 = inlined_call_operand.vmem [shape: f32[32,8], index: 7, kind: output, shape index: {}]  }
   0x1   :  { %13 = vsyncpa [#allocation5], 0  ;;  %s1739_s24 = smov [#allocation4]  }
   0x2   :  { %s37_s25 = sshll.u32 %s1739_s24, 4  ;;  %s38_s25 = int_to_ptr.vmem [resolvable:$true] %s37_s25 }
   0x3   :  { %s1683_s26 = scalar_lea.vmem %s38_s25, 1024  ;;  %p1688_p1 = scmp.lt.s32.totalorder %s38_s25, %s38_s25 }
   0x4   :  { %p1684_p0 = scmp.ne.s32.totalorder %s38_s25, %s1683_s26  ;;  %p1689_p2 = scmp.lt.s32.totalorder %s1683_s26, %s1683_s26 }
   0x6   :  { %p1690_p3 = por %p1689_p2, %p1688_p1 }
   0x8   :  { %p1691_p4 = pnand %p1690_p3, %p1684_p0 }
   0xa   :  { %1694 = shalt.err (!%p1691_p4)
}
   0xb   :  { %s1740_s27 = smov 64   ;;  %s1741_s28 = smov 4  }
   0xc   :  { %43 = dma.hbm_to_vmem [thread:$0]  %s2046_s4, 1024, %s38_s25, [#allocation5], %s1740_s27, %s1740_s27, %s1741_s28  }
   0xd   :  { %s1742_s8 = smov [#allocation2]  }
   0xe   :  { %s23_s9 = sshll.u32 %s1742_s8, 4  ;;  %s24_s9 = int_to_ptr.vmem [resolvable:$true] %s23_s9 }
   0xf   :  { %s1703_s10 = scalar_lea.vmem %s24_s9, 8192  ;;  %p1708_p6 = scmp.lt.s32.totalorder %s24_s9, %s24_s9 }
  0x10   :  { %p1704_p5 = scmp.ne.s32.totalorder %s24_s9, %s1703_s10  ;;  %p1709_p7 = scmp.lt.s32.totalorder %s1703_s10, %s1703_s10 }
  0x12   :  { %p1710_p8 = por %p1709_p7, %p1708_p6 }
  0x14   :  { %p1711_p9 = pnand %p1710_p8, %p1704_p5 }
  0x16   :  { %1714 = shalt.err (!%p1711_p9)
}
  0x17   :  { %s1743_s11 = smov 128   ;;  %s1744_s12 = smov 8  }
  0x18   :  { %29 = dma.hbm_to_vmem [thread:$0]  %s2044_s2, 8192, %s24_s9, [#allocation3], %s1743_s11, %s1743_s11, %s1744_s12  }
  0x19   :  { %s1745_s15 = smov [#allocation6]  }
  0x1a   :  { %s49_s16 = sshll.u32 %s1745_s15, 4  ;;  %s50_s16 = int_to_ptr.vmem [resolvable:$true] %s49_s16 }
  0x1b   :  { %s1723_s4 = scalar_lea.vmem %s50_s16, 1024  ;;  %p1728_p11 = scmp.lt.s32.totalorder %s50_s16, %s50_s16 }
  0x1c   :  { %p1724_p10 = scmp.ne.s32.totalorder %s50_s16, %s1723_s4  ;;  %p1729_p12 = scmp.lt.s32.totalorder %s1723_s4, %s1723_s4 }
  0x1e   :  { %p1730_p13 = por %p1729_p12, %p1728_p11 }
  0x20   :  { %p1731_p0 = pnand %p1730_p13, %p1724_p10 }
  0x22   :  { %1734 = shalt.err (!%p1731_p0)
}
  0x23   :  { %55 = dma.hbm_to_vmem [thread:$0]  %s2047_s5, 1024, %s50_s16, [#allocation5], %s1740_s27, %s1740_s27, %s1741_s28  }
  0x24   :  { %1735 = dma.done.wait [#allocation3], 8192  }
  0x25   :  { %1736 = vsyncadd [#allocation3], 4294959104 }
  0x26   :  { %1737 = dma.done.wait [#allocation5], 2048  }
  0x27   :  { %1738 = vsyncadd [#allocation5], 4294965248  ;;  %v1463_v0 = vld [vmem:[#allocation2 + $0x74] ss:$8 sps:$4 sm:$0xff]   ;;  %v1467_v2 = vld [vmem:[#allocation2 + $0x70] ss:$8 sps:$4 sm:$0xff]  }
  0x28   :  { %v1465_v1 = vld [vmem:[#allocation2 + $0x174] ss:$8 sps:$4 sm:$0xff]   ;;  %510 = vmatprep.subr.bf16.mxu0 %v1463_v0  ;;  %v1468_v3 = vld [vmem:[#allocation2 + $0x170] ss:$8 sps:$4 sm:$0xff]   ;;  %v1469_v4 = vld [vmem:[#allocation2 + $0x64] ss:$8 sps:$4 sm:$0xff]  }
  0x29   :  { %563 = vmatprep.subr.bf16.mxu1 %v1465_v1  ;;  %511 = vmatpush1.bf16.msra.mxu0 %v1467_v2  ;;  %v1471_v5 = vld [vmem:[#allocation2 + $0x164] ss:$8 sps:$4 sm:$0xff]   ;;  %v1473_v6 = vld [vmem:[#allocation2 + $0x60] ss:$8 sps:$4 sm:$0xff]   ;;  %v1475_v8 = vld [vmem:[#allocation2 + $0x54] ss:$8 sps:$4 sm:$0xff]  }
  0x2a   :  { %564 = vmatpush1.bf16.msra.mxu1 %v1468_v3  ;;  %512 = vmatprep.subr.bf16.mxu0 %v1469_v4  ;;  %v1474_v7 = vld [vmem:[#allocation2 + $0x160] ss:$8 sps:$4 sm:$0xff]   ;;  %v1477_v9 = vld [vmem:[#allocation2 + $0x154] ss:$8 sps:$4 sm:$0xff]   ;;  %v1479_v10 = vld [vmem:[#allocation2 + $0x50] ss:$8 sps:$4 sm:$0xff]  }
  0x2b   :  { %565 = vmatprep.subr.bf16.mxu1 %v1471_v5  ;;  %v1480_v11 = vld [vmem:[#allocation2 + $0x150] ss:$8 sps:$4 sm:$0xff]   ;;  %v1481_v12 = vld [vmem:[#allocation2 + $0x44] ss:$8 sps:$4 sm:$0xff]   ;;  %v1485_v14 = vld [vmem:[#allocation2 + $0x40] ss:$8 sps:$4 sm:$0xff]  }
  0x2c   :  { %v1483_v13 = vld [vmem:[#allocation2 + $0x144] ss:$8 sps:$4 sm:$0xff]   ;;  %v1486_v15 = vld [vmem:[#allocation2 + $0x140] ss:$8 sps:$4 sm:$0xff]   ;;  %v1487_v16 = vld [vmem:[#allocation2 + $0x34] ss:$8 sps:$4 sm:$0xff]  }
  0x2d   :  { %513 = vmatpush1.bf16.msra.mxu0 %v1473_v6  ;;  %v1489_v17 = vld [vmem:[#allocation2 + $0x134] ss:$8 sps:$4 sm:$0xff]   ;;  %v1491_v18 = vld [vmem:[#allocation2 + $0x30] ss:$8 sps:$4 sm:$0xff]   ;;  %v1493_v20 = vld [vmem:[#allocation2 + $0x24] ss:$8 sps:$4 sm:$0xff]  }
  0x2e   :  { %566 = vmatpush1.bf16.msra.mxu1 %v1474_v7  ;;  %514 = vmatprep.subr.bf16.mxu0 %v1475_v8  ;;  %v1492_v19 = vld [vmem:[#allocation2 + $0x130] ss:$8 sps:$4 sm:$0xff]   ;;  %v1495_v21 = vld [vmem:[#allocation2 + $0x124] ss:$8 sps:$4 sm:$0xff]   ;;  %v1497_v22 = vld [vmem:[#allocation2 + $0x20] ss:$8 sps:$4 sm:$0xff]  }
  0x2f   :  { %567 = vmatprep.subr.bf16.mxu1 %v1477_v9  ;;  %v1498_v23 = vld [vmem:[#allocation2 + $0x120] ss:$8 sps:$4 sm:$0xff]   ;;  %v1499_v24 = vld [vmem:[#allocation2 + $0x14] ss:$8 sps:$4 sm:$0xff]   ;;  %v1503_v26 = vld [vmem:[#allocation2 + $0x10] ss:$8 sps:$4 sm:$0xff]  }
  0x30   :  { %v1501_v25 = vld [vmem:[#allocation2 + $0x114] ss:$8 sps:$4 sm:$0xff]   ;;  %v1504_v27 = vld [vmem:[#allocation2 + $0x110] ss:$8 sps:$4 sm:$0xff]   ;;  %v1505_v28 = vld [vmem:[#allocation2 + $0x4] ss:$8 sps:$4 sm:$0xff]  }
  0x31   :  { %515 = vmatpush1.bf16.msra.mxu0 %v1479_v10  ;;  %v1507_v29 = vld [vmem:[#allocation2 + $0x104] ss:$8 sps:$4 sm:$0xff]   ;;  %v1509_v30 = vld [vmem:[#allocation2] ss:$8 sps:$4 sm:$0xff]   ;;  %v1511_v32 = vld [vmem:[#allocation2 + $0xf4] ss:$8 sps:$4 sm:$0xff]  }
  0x32   :  { %568 = vmatpush1.bf16.msra.mxu1 %v1480_v11  ;;  %516 = vmatprep.subr.bf16.mxu0 %v1481_v12  ;;  %v1510_v31 = vld [vmem:[#allocation2 + $0x100] ss:$8 sps:$4 sm:$0xff]   ;;  %v1513_v33 = vld [vmem:[#allocation2 + $0x1f4] ss:$8 sps:$4 sm:$0xff]   ;;  %v1515_v34 = vld [vmem:[#allocation2 + $0xf0] ss:$8 sps:$4 sm:$0xff]  }
  0x33   :  { %569 = vmatprep.subr.bf16.mxu1 %v1483_v13  ;;  %v1516_v35 = vld [vmem:[#allocation2 + $0x1f0] ss:$8 sps:$4 sm:$0xff]   ;;  %v1517_v36 = vld [vmem:[#allocation2 + $0xe4] ss:$8 sps:$4 sm:$0xff]   ;;  %v1521_v38 = vld [vmem:[#allocation2 + $0xe0] ss:$8 sps:$4 sm:$0xff]  }
  0x34   :  { %v1519_v37 = vld [vmem:[#allocation2 + $0x1e4] ss:$8 sps:$4 sm:$0xff]   ;;  %v1522_v39 = vld [vmem:[#allocation2 + $0x1e0] ss:$8 sps:$4 sm:$0xff]   ;;  %v1523_v40 = vld [vmem:[#allocation2 + $0xd4] ss:$8 sps:$4 sm:$0xff]  }
  0x35   :  { %517 = vmatpush1.bf16.msra.mxu0 %v1485_v14  ;;  %v1525_v41 = vld [vmem:[#allocation2 + $0x1d4] ss:$8 sps:$4 sm:$0xff]   ;;  %v1527_v42 = vld [vmem:[#allocation2 + $0xd0] ss:$8 sps:$4 sm:$0xff]   ;;  %v1529_v44 = vld [vmem:[#allocation2 + $0xc4] ss:$8 sps:$4 sm:$0xff]  }
  0x36   :  { %570 = vmatpush1.bf16.msra.mxu1 %v1486_v15  ;;  %518 = vmatprep.subr.bf16.mxu0 %v1487_v16  ;;  %v1528_v43 = vld [vmem:[#allocation2 + $0x1d0] ss:$8 sps:$4 sm:$0xff]   ;;  %v1531_v45 = vld [vmem:[#allocation2 + $0x1c4] ss:$8 sps:$4 sm:$0xff]   ;;  %v1533_v46 = vld [vmem:[#allocation2 + $0xc0] ss:$8 sps:$4 sm:$0xff]  }
  0x37   :  { %571 = vmatprep.subr.bf16.mxu1 %v1489_v17  ;;  %v1534_v47 = vld [vmem:[#allocation2 + $0x1c0] ss:$8 sps:$4 sm:$0xff]   ;;  %v1535_v48 = vld [vmem:[#allocation2 + $0xb4] ss:$8 sps:$4 sm:$0xff]   ;;  %v1539_v52 = vld [vmem:[#allocation2 + $0xb0] ss:$8 sps:$4 sm:$0xff]  }
  0x38   :  { %v1561_v49 = vld [vmem:[%s2042_s0 + $0x4] ss:$16 sps:$4 sm:$0xff]   ;;  %v1564_v51 = vld [vmem:[%s2042_s0 + $0xc] ss:$16 sps:$4 sm:$0xff]   ;;  %v1540_v53 = vld [vmem:[#allocation2 + $0x1b0] ss:$8 sps:$4 sm:$0xff]  }
  0x39   :  { %519 = vmatpush1.bf16.msra.mxu0 %v1491_v18  ;;  %v1537_v50 = vld [vmem:[#allocation2 + $0x1b4] ss:$8 sps:$4 sm:$0xff]   ;;  %542 = vmatprep.mubr.bf16.mxu0 %v1561_v49  ;;  %v1541_v54 = vld [vmem:[#allocation2 + $0xa4] ss:$8 sps:$4 sm:$0xff]   ;;  %v1545_v56 = vld [vmem:[#allocation2 + $0xa0] ss:$8 sps:$4 sm:$0xff]  }
  0x3a   :  { %572 = vmatpush1.bf16.msra.mxu1 %v1492_v19  ;;  %520 = vmatprep.subr.bf16.mxu0 %v1493_v20  ;;  %v1543_v55 = vld [vmem:[#allocation2 + $0x1a4] ss:$8 sps:$4 sm:$0xff]   ;;  %v1546_v57 = vld [vmem:[#allocation2 + $0x1a0] ss:$8 sps:$4 sm:$0xff]   ;;  %v1547_v58 = vld [vmem:[#allocation2 + $0x94] ss:$8 sps:$4 sm:$0xff]  }
  0x3b   :  { %573 = vmatprep.subr.bf16.mxu1 %v1495_v21  ;;  %595 = vmatprep.mubr.bf16.mxu1 %v1564_v51  ;;  %v1549_v59 = vld [vmem:[#allocation2 + $0x194] ss:$8 sps:$4 sm:$0xff]   ;;  %v1551_v60 = vld [vmem:[#allocation2 + $0x90] ss:$8 sps:$4 sm:$0xff]   ;;  %v1553_v62 = vld [vmem:[#allocation2 + $0x84] ss:$8 sps:$4 sm:$0xff]  }
  0x3c   :  { %v1552_v61 = vld [vmem:[#allocation2 + $0x190] ss:$8 sps:$4 sm:$0xff]   ;;  %v1555_v63 = vld [vmem:[#allocation2 + $0x184] ss:$8 sps:$4 sm:$0xff]   ;;  %v1557_v0 = vld [vmem:[#allocation2 + $0x80] ss:$8 sps:$4 sm:$0xff]  }
  0x3d   :  { %521 = vmatpush1.bf16.msra.mxu0 %v1497_v22  ;;  %v1558_v1 = vld [vmem:[#allocation2 + $0x180] ss:$8 sps:$4 sm:$0xff]   ;;  %v1571_v2 = vld [vmem:[%s2045_s3 + $0x78] sm:$0xff]   ;;  %v1565_v5 = vld [vmem:[%s2042_s0 + $0x24] ss:$16 sps:$4 sm:$0xff]   ;;  %vm1250_vm12 = vcmask 64512  }
  0x3e   :  { %574 = vmatpush1.bf16.msra.mxu1 %v1498_v23  ;;  %522 = vmatprep.subr.bf16.mxu0 %v1499_v24  ;;  %v1559_v3 = vld [vmem:[%s2042_s0] ss:$16 sps:$4 sm:$0xff]   ;;  %v1562_v4 = vld [vmem:[%s2042_s0 + $0x8] ss:$16 sps:$4 sm:$0xff]   ;;  %v1567_v6 = vld [vmem:[%s2042_s0 + $0x2c] ss:$16 sps:$4 sm:$0xff]   ;;  %v142_v24 = vlaneseq }
  0x3f   :  { %575 = vmatprep.subr.bf16.mxu1 %v1501_v25  ;;  %v1572_v7 = vld [vmem:[%s2045_s3 + $0x38] sm:$0xff]   ;;  %v1569_v8 = vld [vmem:[%s2042_s0 + $0x20] ss:$16 sps:$4 sm:$0xff]   ;;  %v1575_v12 = vld [vmem:[%s2045_s3 + $0x68] sm:$0xff]  }
  0x40   :  { %v1570_v9 = vld [vmem:[%s2042_s0 + $0x28] ss:$16 sps:$4 sm:$0xff]   ;;  %v1573_v10 = vld [vmem:[%s2045_s3 + $0x70] sm:$0xff]   ;;  %v1577_v14 = vld [vmem:[%s2045_s3 + $0x60] sm:$0xff]   ;;  %v1869_v25 = vshrl.u32 %v142_v24, 7 }
  0x41   :  { %523 = vmatpush1.bf16.msra.mxu0 %v1503_v26  ;;  %v1574_v11 = vld [vmem:[%s2045_s3 + $0x30] sm:$0xff]   ;;  %v1576_v13 = vld [vmem:[%s2045_s3 + $0x28] sm:$0xff]   ;;  %v1578_v15 = vld [vmem:[%s2045_s3 + $0x20] sm:$0xff]  }
  0x42   :  { %576 = vmatpush1.bf16.msra.mxu1 %v1504_v27  ;;  %524 = vmatprep.subr.bf16.mxu0 %v1505_v28  ;;  %v1579_v16 = vld [vmem:[%s2045_s3 + $0x58] sm:$0xff]   ;;  %v1581_v18 = vld [vmem:[%s2045_s3 + $0x50] sm:$0xff]   ;;  %v1583_v20 = vld [vmem:[%s2045_s3 + $0x48] sm:$0xff]   ;;  %v144_v26 = vsub.s32 0, %v1869_v25 }
  0x43   :  { %577 = vmatprep.subr.bf16.mxu1 %v1507_v29  ;;  %v1580_v17 = vld [vmem:[%s2045_s3 + $0x18] sm:$0xff]   ;;  %v1582_v19 = vld [vmem:[%s2045_s3 + $0x10] sm:$0xff]   ;;  %v1584_v21 = vld [vmem:[%s2045_s3 + $0x8] sm:$0xff]  }
  0x44   :  { %v1585_v22 = vld [vmem:[%s2045_s3 + $0x40] sm:$0xff]   ;;  %v77_v27 = vld [vmem:[%s2048_s6 + $0x8] sm:$0xff] }
  0x45   :  { %525 = vmatpush1.bf16.msra.mxu0 %v1509_v30  ;;  %v1586_v23 = vld [vmem:[%s2045_s3] sm:$0xff]   ;;  %v149_v29 = vrot.slane %v77_v27, %v144_v26 }
  0x46   :  { %578 = vmatpush1.bf16.msra.mxu1 %v1510_v31  ;;  %526 = vmatprep.subr.bf16.mxu0 %v1511_v32  ;;  %v1878_v28 = vld [vmem:[%s2048_s6] sm:$0xff] }
  0x47   :  { %579 = vmatprep.subr.bf16.mxu1 %v1513_v33  ;;  %v145_v30 = vrot.slane %v1878_v28, %v144_v26 }
  0x49   :  { %527 = vmatpush2.bf16.msra.mxu0 %v1515_v34 }
  0x4a   :  { %580 = vmatpush2.bf16.msra.mxu1 %v1516_v35  ;;  %528 = vmatprep.subr.bf16.mxu0 %v1517_v36 }
  0x4b   :  { %581 = vmatprep.subr.bf16.mxu1 %v1519_v37 }
  0x4d   :  { %529 = vmatpush2.bf16.msra.mxu0 %v1521_v38 }
  0x4e   :  { %582 = vmatpush2.bf16.msra.mxu1 %v1522_v39  ;;  %530 = vmatprep.subr.bf16.mxu0 %v1523_v40 }
  0x4f   :  { %583 = vmatprep.subr.bf16.mxu1 %v1525_v41 }
  0x51   :  { %531 = vmatpush2.bf16.msra.mxu0 %v1527_v42 }
  0x52   :  { %584 = vmatpush2.bf16.msra.mxu1 %v1528_v43  ;;  %532 = vmatprep.subr.bf16.mxu0 %v1529_v44 }
  0x53   :  { %585 = vmatprep.subr.bf16.mxu1 %v1531_v45 }
  0x55   :  { %533 = vmatpush2.bf16.msra.mxu0 %v1533_v46 }
  0x56   :  { %586 = vmatpush2.bf16.msra.mxu1 %v1534_v47  ;;  %534 = vmatprep.subr.bf16.mxu0 %v1535_v48 }
  0x57   :  { %587 = vmatprep.subr.bf16.mxu1 %v1537_v50 }
  0x59   :  { %535 = vmatpush2.bf16.msra.mxu0 %v1539_v52 }
  0x5a   :  { %588 = vmatpush2.bf16.msra.mxu1 %v1540_v53  ;;  %536 = vmatprep.subr.bf16.mxu0 %v1541_v54 }
  0x5b   :  { %589 = vmatprep.subr.bf16.mxu1 %v1543_v55 }
  0x5d   :  { %537 = vmatpush2.bf16.msra.mxu0 %v1545_v56 }
  0x5e   :  { %590 = vmatpush2.bf16.msra.mxu1 %v1546_v57  ;;  %538 = vmatprep.subr.bf16.mxu0 %v1547_v58 }
  0x5f   :  { %591 = vmatprep.subr.bf16.mxu1 %v1549_v59 }
  0x61   :  { %539 = vmatpush2.bf16.msra.mxu0 %v1551_v60 }
  0x62   :  { %592 = vmatpush2.bf16.msra.mxu1 %v1552_v61  ;;  %540 = vmatprep.subr.bf16.mxu0 %v1553_v62 }
  0x63   :  { %593 = vmatprep.subr.bf16.mxu1 %v1555_v63 }
  0x65   :  { %541 = vmatpush2.bf16.msra.mxu0 %v1557_v0 }
  0x66   :  { %594 = vmatpush2.bf16.msra.mxu1 %v1558_v1  ;;  %1365 = vmatprep.subr.bf16.mxu0 %v1571_v2 }
  0x68   :  { %543 = vmatmul.mubr.bf16.vlgmr.msra.gmra.mxu0 %v1559_v3 }
  0x69   :  { %596 = vmatmul.mubr.bf16.vlgmr.msra.gmra.mxu1 %v1562_v4  ;;  %552 = vmatprep.mubr.bf16.mxu0 %v1565_v5 }
  0x6a   :  { %605 = vmatprep.mubr.bf16.mxu1 %v1567_v6  ;;  %1366 = vmatpush3.bf16.msra.mxu0 %v1572_v7 }
  0x6b   :  { %1367 = vmatprep.subr.bf16.mxu0 %v1573_v10 }
  0x6e   :  { %1368 = vmatpush3.bf16.msra.mxu0 %v1574_v11  ;;  %v1587_v11 = vld [vmem:[#allocation4 + $0x38] sm:$0xff]  }
  0x6f   :  { %1369 = vmatprep.subr.bf16.mxu0 %v1575_v12  ;;  %1413 = vmatprep.subr.bf16.mxu1 %v1587_v11  ;;  %v1588_v12 = vld [vmem:[#allocation4 + $0x30] sm:$0xff]  }
  0x70   :  { %553 = vmatmul.mubr.bf16.gmra.mxu0 %v1569_v8  ;;  %1414 = vmatpush3.bf16.msra.mxu1 %v1587_v11 }
  0x71   :  { %606 = vmatmul.mubr.bf16.gmra.mxu1 %v1570_v9  ;;  %1415 = vmatprep.subr.bf16.mxu1 %v1588_v12 }
  0x72   :  { %1370 = vmatpush3.bf16.msra.mxu0 %v1576_v13  ;;  %v1589_v13 = vld [vmem:[#allocation4 + $0x28] sm:$0xff]  }
  0x73   :  { %1371 = vmatprep.subr.bf16.mxu0 %v1577_v14  ;;  %v1590_v14 = vld [vmem:[#allocation4 + $0x20] sm:$0xff]  }
  0x74   :  { %1416 = vmatpush3.bf16.msra.mxu1 %v1588_v12 }
  0x75   :  { %1417 = vmatprep.subr.bf16.mxu1 %v1589_v13 }
  0x76   :  { %1372 = vmatpush3.bf16.msra.mxu0 %v1578_v15  ;;  %v1591_v15 = vld [vmem:[#allocation4 + $0x18] sm:$0xff]  }
  0x77   :  { %1373 = vmatprep.subr.bf16.mxu0 %v1579_v16  ;;  %v1592_v16 = vld [vmem:[#allocation4 + $0x10] sm:$0xff]  }
  0x78   :  { %1418 = vmatpush3.bf16.msra.mxu1 %v1589_v13 }
  0x79   :  { %1419 = vmatprep.subr.bf16.mxu1 %v1590_v14 }
  0x7a   :  { %1374 = vmatpush3.bf16.msra.mxu0 %v1580_v17  ;;  %v1593_v17 = vld [vmem:[#allocation4 + $0x8] sm:$0xff]  }
  0x7b   :  { %1375 = vmatprep.subr.bf16.mxu0 %v1581_v18  ;;  %v1594_v18 = vld [vmem:[#allocation4] sm:$0xff]  }
  0x7c   :  { %1420 = vmatpush3.bf16.msra.mxu1 %v1590_v14 }
  0x7d   :  { %1421 = vmatprep.subr.bf16.mxu1 %v1591_v15 }
  0x7e   :  { %1376 = vmatpush3.bf16.msra.mxu0 %v1582_v19  ;;  %v1595_v19 = vld [vmem:[#allocation6 + $0x38] sm:$0xff]  }
  0x7f   :  { %1377 = vmatprep.subr.bf16.mxu0 %v1583_v20  ;;  %v1596_v20 = vld [vmem:[#allocation6 + $0x30] sm:$0xff]  }
  0x80   :  { %1422 = vmatpush3.bf16.msra.mxu1 %v1591_v15 }
  0x81   :  { %1423 = vmatprep.subr.bf16.mxu1 %v1592_v16 }
  0x82   :  { %1378 = vmatpush3.bf16.msra.mxu0 %v1584_v21  ;;  %v662_v21 = vsub.s32 1, %v1869_v25 }
  0x83   :  { %1379 = vmatprep.subr.bf16.mxu0 %v1585_v22 }
  0x84   :  { %1424 = vmatpush3.bf16.msra.mxu1 %v1592_v16 }
  0x85   :  { %1425 = vmatprep.subr.bf16.mxu1 %v1593_v17 }
  0x86   :  { %1380 = vmatpush3.bf16.msra.mxu0 %v1586_v23  ;;  %v663_v23 = vrot.slane %v1878_v28, %v662_v21 }
  0x87   :  { %1433 = vmatprep.subr.bf16.mxu0 %v1595_v19 }
  0x88   :  { %1426 = vmatpush3.bf16.msra.mxu1 %v1593_v17 }
  0x89   :  { %1427 = vmatprep.subr.bf16.mxu1 %v1594_v18 }
  0x8c   :  { %1428 = vmatpush3.bf16.msra.mxu1 %v1594_v18 }
 0x128   :  { %v544_v31 = vpop.f32.mrf.mxu0 }
 0x129   :  { %v597_v32 = vpop.f32.mrf.mxu1  ;;  %v545_v36 = vadd.f32 %v544_v31, %v145_v30 }
 0x12a   :  { %v546_v33 = vpop.f32.mrf.mxu0 }
 0x12b   :  { %v599_v34 = vpop.f32.mrf.mxu1  ;;  %v547_v35 = vadd.f32 %v546_v33, %v149_v29  ;;  %v598_v45 = vadd.f32 %v597_v32, %v545_v36 }
 0x12c   :  { %v548_v37 = vpop.f32.mrf.mxu0 }
 0x12d   :  { %v601_v38 = vpop.f32.mrf.mxu1  ;;  %v600_v39 = vadd.f32 %v599_v34, %v547_v35  ;;  %v549_v40 = vadd.f32 %v548_v37, %v145_v30 }
 0x12e   :  { %v550_v41 = vpop.f32.mrf.mxu0 }
 0x12f   :  { %v603_v42 = vpop.f32.mrf.mxu1  ;;  %v602_v43 = vadd.f32 %v601_v38, %v549_v40  ;;  %v551_v44 = vadd.f32 %v550_v41, %v149_v29  ;;  %1603 = vtanh.f32 %v600_v39 }
 0x130   :  { %v554_v46 = vpop.f32.mrf.mxu0 }
 0x131   :  { %v607_v47 = vpop.f32.mrf.mxu1  ;;  %v604_v48 = vadd.f32 %v603_v42, %v551_v44  ;;  %1605 = vtanh.f32 %v602_v43  ;;  %v555_v52 = vadd.f32 %v554_v46, %v145_v30 }
 0x132   :  { %v556_v49 = vpop.f32.mrf.mxu0 }
 0x133   :  { %v609_v50 = vpop.f32.mrf.mxu1  ;;  %1607 = vtanh.f32 %v604_v48  ;;  %v557_v51 = vadd.f32 %v556_v49, %v149_v29  ;;  %v608_v60 = vadd.f32 %v607_v47, %v555_v52  ;;  %v1597_v48 = vld [vmem:[#allocation6 + $0x28] sm:$0xff]   ;;  %v1598_v49 = vld [vmem:[#allocation6 + $0x20] sm:$0xff]  }
 0x134   :  { %1609 = vtanh.f32 %v598_v45  ;;  %v558_v53 = vpop.f32.mrf.mxu0  ;;  %v1601_v52 = vld [vmem:[#allocation6 + $0x8] sm:$0xff]  }
 0x135   :  { %v611_v54 = vpop.f32.mrf.mxu1  ;;  %v610_v55 = vadd.f32 %v609_v50, %v557_v51  ;;  %v559_v56 = vadd.f32 %v558_v53, %v145_v30  ;;  %v1599_v50 = vld [vmem:[#allocation6 + $0x18] sm:$0xff]   ;;  %v1600_v51 = vld [vmem:[#allocation6 + $0x10] sm:$0xff]   ;;  %v1602_v53 = vld [vmem:[#allocation6] sm:$0xff]  }
 0x136   :  { %v560_v57 = vpop.f32.mrf.mxu0 }
 0x137   :  { %v612_v58 = vadd.f32 %v611_v54, %v559_v56  ;;  %v561_v59 = vadd.f32 %v560_v57, %v149_v29  ;;  %v613_v61 = vpop.f32.mrf.mxu1  ;;  %1611 = vtanh.f32 %v610_v55  ;;  %v833_v54 = vsub.s32 2, %v1869_v25 }
 0x139   :  { %v614_v62 = vadd.f32 %v613_v61, %v561_v59  ;;  %1613 = vtanh.f32 %v612_v58  ;;  %v834_v56 = vrot.slane %v1878_v28, %v833_v54 }
 0x13b   :  { %1615 = vtanh.f32 %v614_v62 }
 0x13c   :  { %1617 = vtanh.f32 %v608_v60  ;;  %v1604_v63 = vpop.eup %1603 }
 0x13e   :  { %v1606_v0 = vpop.eup %1605 }
 0x140   :  { %v1608_v1 = vpop.eup %1607 }
 0x141   :  { %v1610_v2 = vpop.eup %1609  ;;  %v625_v3 = vpack.c.bf16 %v1608_v1, %v1604_v63 }
 0x142   :  { %v624_v4 = vpack.c.bf16 %v1606_v0, %v1610_v2 }
 0x143   :  { %792 = vmatprep.mubr.bf16.mxu0 %v625_v3 }
 0x144   :  { %793 = vmatmul.mubr.bf16.vlgmr.msra.gmra.mxu0 %v624_v4  ;;  %v1612_v5 = vpop.eup %1611 }
 0x145   :  { %1434 = vmatpush3.bf16.msra.mxu0 %v1595_v19 }
 0x146   :  { %v1614_v6 = vpop.eup %1613  ;;  %1435 = vmatprep.subr.bf16.mxu0 %v1596_v20 }
 0x148   :  { %v1616_v7 = vpop.eup %1615 }
 0x149   :  { %v1618_v8 = vpop.eup %1617  ;;  %v627_v9 = vpack.c.bf16 %v1616_v7, %v1612_v5  ;;  %1436 = vmatpush3.bf16.msra.mxu0 %v1596_v20  ;;  %v1887_v7 = vand.u32 127, %v142_v24 }
 0x14a   :  { %v626_v10 = vpack.c.bf16 %v1614_v6, %v1618_v8  ;;  %1437 = vmatprep.subr.bf16.mxu0 %v1597_v48  ;;  %v956_v6 = vsub.s32 3, %v1869_v25 }
 0x14b   :  { %800 = vmatprep.mubr.bf16.mxu0 %v627_v9  ;;  %vm1057_vm0 = vcmp.lt.s32.totalorder %v1887_v7, 32  ;;  %vm1217_vm9 = vcmp.eq.s32.totalorder %v1887_v7, 2  ;;  %vm1216_vm10 = vcmp.eq.s32.totalorder %v1887_v7, 1  ;;  %vm1215_vm11 = vcmp.eq.s32.totalorder %v1887_v7, 0 }
 0x14c   :  { %801 = vmatmul.mubr.bf16.gmra.mxu0 %v626_v10  ;;  %v957_v8 = vrot.slane %v1878_v28, %v956_v6 }
 0x14d   :  { %1438 = vmatpush3.bf16.msra.mxu0 %v1597_v48 }
 0x14e   :  { %1439 = vmatprep.subr.bf16.mxu0 %v1598_v49 }
 0x151   :  { %1440 = vmatpush3.bf16.msra.mxu0 %v1598_v49 }
 0x152   :  { %1441 = vmatprep.subr.bf16.mxu0 %v1599_v50 }
 0x155   :  { %1442 = vmatpush3.bf16.msra.mxu0 %v1599_v50 }
 0x156   :  { %1443 = vmatprep.subr.bf16.mxu0 %v1600_v51 }
 0x159   :  { %1444 = vmatpush3.bf16.msra.mxu0 %v1600_v51 }
 0x15a   :  { %1445 = vmatprep.subr.bf16.mxu0 %v1601_v52 }
 0x15d   :  { %1446 = vmatpush3.bf16.msra.mxu0 %v1601_v52 }
 0x15e   :  { %1447 = vmatprep.subr.bf16.mxu0 %v1602_v53 }
 0x161   :  { %1448 = vmatpush3.bf16.msra.mxu0 %v1602_v53 }
 0x204   :  { %v1381_v22 = vpop.f32.mrf.mxu0 }
 0x206   :  { %v1382_v26 = vpop.f32.mrf.mxu0 }
 0x207   :  { %v1383_v27 = vadd.f32 %v1382_v26, %v1381_v22 }
 0x208   :  { %v1384_v29 = vpop.f32.mrf.mxu0 }
 0x209   :  { %v795_v30 = vadd.f32 %v1383_v27, %v663_v23 }
 0x20a   :  { %v1385_v31 = vpop.f32.mrf.mxu0 }
 0x20b   :  { %v1386_v32 = vadd.f32 %v1385_v31, %v1384_v29  ;;  %1619 = vtanh.f32 %v795_v30 }
 0x20c   :  { %v1387_v33 = vpop.f32.mrf.mxu0 }
 0x20d   :  { %v798_v34 = vadd.f32 %v1386_v32, %v663_v23 }
 0x20e   :  { %v1388_v35 = vpop.f32.mrf.mxu0 }
 0x20f   :  { %1621 = vtanh.f32 %v798_v34  ;;  %v1389_v36 = vadd.f32 %v1388_v35, %v1387_v33 }
 0x210   :  { %v1390_v37 = vpop.f32.mrf.mxu0 }
 0x211   :  { %v803_v38 = vadd.f32 %v1389_v36, %v663_v23 }
 0x212   :  { %v1391_v39 = vpop.f32.mrf.mxu0 }
 0x213   :  { %v1392_v40 = vadd.f32 %v1391_v39, %v1390_v37  ;;  %1623 = vtanh.f32 %v803_v38 }
 0x215   :  { %v806_v41 = vadd.f32 %v1392_v40, %v663_v23 }
 0x217   :  { %1625 = vtanh.f32 %v806_v41 }
 0x218   :  { %v1620_v42 = vpop.eup %1619 }
 0x21c   :  { %v1622_v43 = vpop.eup %1621 }
 0x21d   :  { %v813_v44 = vpack.c.bf16 %v1622_v43, %v1620_v42  ;;  %v1922_v42 = vld [vmem:[%s2043_s1] sm:$0xff] }
 0x21e   :  { %v1104_v48 = vunpack.c.1.s8 %v1922_v42  ;;  %v1105_v49 = vunpack.c.2.s8 %v1922_v42  ;;  %v1106_v52 = vunpack.c.3.s8 %v1922_v42 }
 0x21f   :  { %1429 = vmatprep.mubr.bf16.mxu1 %v813_v44 }
 0x220   :  { %v1624_v45 = vpop.eup %1623  ;;  %v1934_v51 = vand.u32 1, %v1104_v48  ;;  %v1939_v54 = vand.u32 1, %v1105_v49 }
 0x222   :  { %vm1112_vm2 = vcmp.ne.s32.totalorder %v1934_v51, 0  ;;  %vm1113_vm3 = vcmp.ne.s32.totalorder %v1939_v54, 0 }
 0x224   :  { %v1626_v46 = vpop.eup %1625 }
 0x225   :  { %v814_v47 = vpack.c.bf16 %v1626_v46, %v1624_v45  ;;  %v1103_v45 = vunpack.c.0.s8 %v1922_v42 }
 0x227   :  { %1430 = vmatmul.mubr.bf16.vlgmr.msra.gmra.mxu1 %v814_v47  ;;  %v1927_v47 = vand.u32 1, %v1103_v45 }
 0x229   :  { %vm1111_vm1 = vcmp.ne.s32.totalorder %v1927_v47, 0 }
 0x2e7   :  { %v1431_v55 = vpop.f32.mrf.mxu1 }
 0x2e8   :  { %v926_v61 = vadd.f32 %v1431_v55, %v834_v56 }
 0x2e9   :  { %v917_v57 = vpop.f32.mrf.mxu1 }
 0x2ea   :  { %v918_v58 = vadd.f32 %v917_v57, %v834_v56  ;;  %v1949_v57 = vand.u32 1, %v1106_v52 }
 0x2eb   :  { %v1432_v59 = vpop.f32.mrf.mxu1 }
 0x2ec   :  { %v929_v60 = vadd.f32 %v1432_v59, %v834_v56  ;;  %1627 = vtanh.f32 %v918_v58  ;;  %vm1114_vm4 = vcmp.ne.s32.totalorder %v1949_v57, 0 }
 0x2ed   :  { %v920_v62 = vpop.f32.mrf.mxu1 }
 0x2ee   :  { %v921_v63 = vadd.f32 %v920_v62, %v834_v56  ;;  %1629 = vtanh.f32 %v929_v60 }
 0x2f0   :  { %1631 = vtanh.f32 %v921_v63 }
 0x2f1   :  { %1633 = vtanh.f32 %v926_v61 }
 0x2f9   :  { %v1628_v0 = vpop.eup %1627 }
 0x2fb   :  { %v1630_v1 = vpop.eup %1629 }
 0x2fd   :  { %v1632_v2 = vpop.eup %1631 }
 0x2fe   :  { %v1634_v3 = vpop.eup %1633  ;;  %v936_v4 = vpack.c.bf16 %v1632_v2, %v1628_v0 }
 0x2ff   :  { %v937_v5 = vpack.c.bf16 %v1630_v1, %v1634_v3 }
 0x300   :  { %1449 = vmatprep.mubr.bf16.mxu0 %v936_v4 }
 0x301   :  { %1450 = vmatmul.mubr.bf16.vlgmr.msra.gmra.mxu0 %v937_v5 }
 0x3c1   :  { %v1451_v9 = vpop.f32.mrf.mxu0 }
 0x3c2   :  { %v1891_v10 = vadd.f32 %v1451_v9, %v957_v8 }
 0x3c3   :  { %v1040_v11 = vpop.f32.mrf.mxu0 }
 0x3c4   :  { %v1893_v12 = vadd.f32 %v1040_v11, %v957_v8  ;;  %v1060_v13 = vsel %vm1057_vm0, %v1891_v10, -1e+08 }
 0x3c5   :  { %1066 = vmax.xlane.f32.xlu1 %v1060_v13  ;;  %v1452_v14 = vpop.f32.mrf.mxu0 }
 0x3c6   :  { %v1898_v25 = vadd.f32 %v1452_v14, %v957_v8  ;;  %v1058_v24 = vsel %vm1057_vm0, %v1893_v12, -1e+08 }
 0x3c7   :  { %v1043_v28 = vpop.f32.mrf.mxu0  ;;  %1062 = vmax.xlane.f32.xlu0 %v1058_v24 }
 0x3c8   :  { %v1903_v15 = vadd.f32 %v1043_v28, %v957_v8  ;;  %v1061_v16 = vsel %vm1057_vm0, %v1898_v25, -1e+08 }
 0x3c9   :  { %1068 = vmax.xlane.f32.xlu1 %v1061_v16 }
 0x3ca   :  { %v1059_v17 = vsel %vm1057_vm0, %v1903_v15, -1e+08 }
 0x3cb   :  { %1064 = vmax.xlane.f32.xlu0 %v1059_v17 }
 0x44e   :  { %v1067_v18 = vpop.xlane.xlu1 %1066 }
 0x44f   :  { %v1072_v19 = vsub.f32 %v1060_v13, %v1067_v18 }
 0x450   :  { %v1063_v20 = vpop.xlane.xlu0 %1062 }
 0x451   :  { %v1070_v21 = vsub.f32 %v1058_v24, %v1063_v20  ;;  %v1078_v23 = vmul.f32 1.442695, %v1072_v19 }
 0x452   :  { %v1069_v22 = vpop.xlane.xlu1 %1068 }
 0x453   :  { %v1074_v26 = vmul.f32 1.442695, %v1070_v21  ;;  %v1073_v27 = vsub.f32 %v1061_v16, %v1069_v22 }
 0x454   :  { %v1065_v29 = vpop.xlane.xlu0 %1064 }
 0x455   :  { %1635 = vpow2.f32 %v1074_v26  ;;  %v1071_v30 = vsub.f32 %v1059_v17, %v1065_v29  ;;  %v1080_v31 = vmul.f32 1.442695, %v1073_v27  ;;  %v1746_v26 = vmov 32  }
 0x456   :  { %1637 = vpow2.f32 %v1078_v23  ;;  %1462 = vset.pattern.permute.xlu1 %v1746_v26  ;;  %1461 = vset.pattern.permute.xlu0 %v1746_v26 }
 0x457   :  { %v1076_v32 = vmul.f32 1.442695, %v1071_v30 }
 0x459   :  { %1639 = vpow2.f32 %v1076_v32 }
 0x45a   :  { %1641 = vpow2.f32 %v1080_v31 }
 0x462   :  { %v1636_v33 = vpop.eup %1635 }
 0x463   :  { %v1082_v34 = vsel %vm1057_vm0, %v1636_v33, 0.0  ;;  %v1638_v35 = vpop.eup %1637 }
 0x464   :  { %1086 = vadd.xlane.f32.xlu0 %v1082_v34  ;;  %v1084_v37 = vsel %vm1057_vm0, %v1638_v35, 0.0 }
 0x466   :  { %v1640_v36 = vpop.eup %1639 }
 0x467   :  { %v1083_v38 = vsel %vm1057_vm0, %v1640_v36, 0.0  ;;  %v1642_v39 = vpop.eup %1641 }
 0x468   :  { %1090 = vadd.xlane.f32.xlu0 %v1084_v37  ;;  %1088 = vadd.xlane.f32.xlu1 %v1083_v38  ;;  %v1085_v40 = vsel %vm1057_vm0, %v1642_v39, 0.0 }
 0x46c   :  { %1092 = vadd.xlane.f32.xlu1 %v1085_v40 }
 0x4ed   :  { %v1087_v41 = vpop.xlane.xlu0 %1086 }
 0x4ee   :  { %1643 = vrcp.f32 %v1087_v41 }
 0x4f1   :  { %v1089_v43 = vpop.xlane.xlu1 %1088  ;;  %v1091_v44 = vpop.xlane.xlu0 %1090 }
 0x4f2   :  { %1645 = vrcp.f32 %v1089_v43 }
 0x4f3   :  { %1647 = vrcp.f32 %v1091_v44  ;;  %v1118_v44 = vand.u32 2, %v1106_v52 }
 0x4f5   :  { %v1093_v46 = vpop.xlane.xlu1 %1092  ;;  %vm1122_vm6 = vcmp.ne.s32.totalorder %v1118_v44, 0 }
 0x4f6   :  { %1649 = vrcp.f32 %v1093_v46 }
 0x4fb   :  { %v1644_v50 = vpop.eup %1643 }
 0x4fc   :  { %v1098_v53 = vmul.f32 %v1644_v50, %v1082_v34  ;;  %v1115_v50 = vand.u32 2, %v1103_v45 }
 0x4fe   :  { %v1943_v55 = vsel %vm1111_vm1, %v1098_v53, -1e+08  ;;  %vm1119_vm7 = vcmp.ne.s32.totalorder %v1115_v50, 0 }
 0x4ff   :  { %v1646_v56 = vpop.eup %1645  ;;  %1127 = vmax.xlane.f32.xlu0 %v1943_v55 }
 0x500   :  { %v1648_v58 = vpop.eup %1647  ;;  %v1099_v59 = vmul.f32 %v1646_v56, %v1083_v38 }
 0x501   :  { %v1100_v60 = vmul.f32 %v1648_v58, %v1084_v37  ;;  %v1117_v37 = vand.u32 2, %v1105_v49 }
 0x502   :  { %v1954_v61 = vsel %vm1112_vm2, %v1099_v59, -1e+08 }
 0x503   :  { %v1650_v62 = vpop.eup %1649  ;;  %1129 = vmax.xlane.f32.xlu1 %v1954_v61  ;;  %v1125_v63 = vsel %vm1113_vm3, %v1100_v60, -1e+08  ;;  %vm1121_vm5 = vcmp.ne.s32.totalorder %v1117_v37, 0 }
 0x504   :  { %1131 = vmax.xlane.f32.xlu0 %v1125_v63  ;;  %v1101_v0 = vmul.f32 %v1650_v62, %v1085_v40 }
 0x506   :  { %v1962_v1 = vsel %vm1114_vm4, %v1101_v0, -1e+08 }
 0x507   :  { %1133 = vmax.xlane.f32.xlu1 %v1962_v1 }
 0x588   :  { %v1128_v2 = vpop.xlane.xlu0 %1127 }
 0x589   :  { %v1135_v3 = vsub.f32 %v1943_v55, %v1128_v2 }
 0x58b   :  { %v1139_v4 = vmul.f32 1.442695, %v1135_v3 }
 0x58c   :  { %v1130_v5 = vpop.xlane.xlu1 %1129 }
 0x58d   :  { %1651 = vpow2.f32 %v1139_v4  ;;  %v1136_v6 = vsub.f32 %v1954_v61, %v1130_v5  ;;  %v1132_v8 = vpop.xlane.xlu0 %1131 }
 0x58e   :  { %v1137_v9 = vsub.f32 %v1125_v63, %v1132_v8 }
 0x58f   :  { %v1141_v11 = vmul.f32 1.442695, %v1136_v6 }
 0x590   :  { %v1143_v13 = vmul.f32 1.442695, %v1137_v9  ;;  %v1134_v14 = vpop.xlane.xlu1 %1133 }
 0x591   :  { %1653 = vpow2.f32 %v1141_v11  ;;  %v1138_v24 = vsub.f32 %v1962_v1, %v1134_v14 }
 0x592   :  { %1655 = vpow2.f32 %v1143_v13 }
 0x593   :  { %v1145_v28 = vmul.f32 1.442695, %v1138_v24 }
 0x595   :  { %1657 = vpow2.f32 %v1145_v28 }
 0x59a   :  { %v1652_v16 = vpop.eup %1651 }
 0x59b   :  { %v1147_v17 = vsel %vm1057_vm0, %v1652_v16, 0.0 }
 0x59c   :  { %1151 = vadd.xlane.f32.xlu0 %v1147_v17 }
 0x59e   :  { %v1654_v18 = vpop.eup %1653 }
 0x59f   :  { %v1656_v19 = vpop.eup %1655  ;;  %v1148_v20 = vsel %vm1057_vm0, %v1654_v18, 0.0 }
 0x5a0   :  { %1153 = vadd.xlane.f32.xlu1 %v1148_v20  ;;  %v1149_v21 = vsel %vm1057_vm0, %v1656_v19, 0.0 }
 0x5a1   :  { %1155 = vadd.xlane.f32.xlu0 %v1149_v21 }
 0x5a2   :  { %v1658_v22 = vpop.eup %1657 }
 0x5a3   :  { %v1150_v23 = vsel %vm1057_vm0, %v1658_v22, 0.0 }
 0x5a4   :  { %1157 = vadd.xlane.f32.xlu1 %v1150_v23 }
 0x625   :  { %v1152_v27 = vpop.xlane.xlu0 %1151 }
 0x626   :  { %1659 = vlog2.f32 %v1152_v27 }
 0x629   :  { %v1154_v29 = vpop.xlane.xlu1 %1153 }
 0x62a   :  { %1661 = vlog2.f32 %v1154_v29  ;;  %v1156_v30 = vpop.xlane.xlu0 %1155 }
 0x62b   :  { %1663 = vlog2.f32 %v1156_v30 }
 0x62d   :  { %v1158_v31 = vpop.xlane.xlu1 %1157 }
 0x62e   :  { %1665 = vlog2.f32 %v1158_v31 }
 0x633   :  { %v1660_v32 = vpop.eup %1659 }
 0x634   :  { %v1160_v33 = vmul.f32 0.6931472, %v1660_v32 }
 0x636   :  { %v1167_v34 = vadd.f32 %v1160_v33, %v1128_v2 }
 0x637   :  { %v1662_v35 = vpop.eup %1661 }
 0x638   :  { %v1664_v36 = vpop.eup %1663  ;;  %v1171_v38 = vsub.f32 %v1943_v55, %v1167_v34  ;;  %v1162_v40 = vmul.f32 0.6931472, %v1662_v35  ;;  %v1116_v55 = vand.u32 2, %v1104_v48 }
 0x639   :  { %v1164_v39 = vmul.f32 0.6931472, %v1664_v36 }
 0x63a   :  { %v1175_v53 = vmul.f32 1.442695, %v1171_v38  ;;  %v1168_v58 = vadd.f32 %v1162_v40, %v1130_v5  ;;  %v1183_v45 = vsel %vm1119_vm7, %v1171_v38, 0.0  ;;  %vm1120_vm8 = vcmp.ne.s32.totalorder %v1116_v55, 0 }
 0x63b   :  { %v1666_v41 = vpop.eup %1665  ;;  %v1169_v43 = vadd.f32 %v1164_v39, %v1132_v8 }
 0x63c   :  { %v1166_v46 = vmul.f32 0.6931472, %v1666_v41  ;;  %1667 = vpow2.f32 %v1175_v53  ;;  %v1172_v0 = vsub.f32 %v1954_v61, %v1168_v58 }
 0x63d   :  { %v1173_v56 = vsub.f32 %v1125_v63, %v1169_v43 }
 0x63e   :  { %v1170_v59 = vadd.f32 %v1166_v46, %v1134_v14  ;;  %v1184_v63 = vsel %vm1120_vm8, %v1172_v0, 0.0  ;;  %v1177_v5 = vmul.f32 1.442695, %v1172_v0 }
 0x63f   :  { %v1185_v60 = vsel %vm1121_vm5, %v1173_v56, 0.0  ;;  %v1179_v49 = vmul.f32 1.442695, %v1173_v56 }
 0x640   :  { %1191 = vadd.xlane.f32.xlu0 %v1185_v60  ;;  %v1174_v62 = vsub.f32 %v1962_v1, %v1170_v59 }
 0x641   :  { %1669 = vpow2.f32 %v1179_v49 }
 0x642   :  { %v1186_v52 = vsel %vm1122_vm6, %v1174_v62, 0.0  ;;  %v1181_v61 = vmul.f32 1.442695, %v1174_v62 }
 0x643   :  { %1193 = vadd.xlane.f32.xlu1 %v1186_v52 }
 0x644   :  { %1187 = vadd.xlane.f32.xlu0 %v1183_v45  ;;  %1671 = vpow2.f32 %v1181_v61 }
 0x645   :  { %1673 = vpow2.f32 %v1177_v5 }
 0x647   :  { %1189 = vadd.xlane.f32.xlu1 %v1184_v63 }
 0x649   :  { %v1668_v2 = vpop.eup %1667 }
 0x64a   :  { %v1195_v48 = vmul.f32 %v1668_v2, %v1171_v38 }
 0x64c   :  { %v1199_v1 = vsel %vm1111_vm1, %v1195_v48, 0.0 }
 0x64e   :  { %v1670_v3 = vpop.eup %1669 }
 0x64f   :  { %v1197_v4 = vmul.f32 %v1670_v3, %v1173_v56 }
 0x651   :  { %v1201_v42 = vsel %vm1113_vm3, %v1197_v4, 0.0  ;;  %v1672_v6 = vpop.eup %1671 }
 0x652   :  { %1207 = vadd.xlane.f32.xlu0 %v1201_v42  ;;  %v1198_v8 = vmul.f32 %v1672_v6, %v1174_v62  ;;  %v1674_v54 = vpop.eup %1673 }
 0x653   :  { %v1196_v11 = vmul.f32 %v1674_v54, %v1172_v0 }
 0x654   :  { %v1202_v9 = vsel %vm1114_vm4, %v1198_v8, 0.0 }
 0x655   :  { %v1200_v47 = vsel %vm1112_vm2, %v1196_v11, 0.0 }
 0x656   :  { %1203 = vadd.xlane.f32.xlu0 %v1199_v1 }
 0x658   :  { %1229 = vperm.xlu1 %1462, %v1903_v15  }
 0x65c   :  { %1234 = vperm.xlu1 %1462, %v1891_v10  }
 0x66c   :  { %1224 = vperm.xlu0 %1461, %v1893_v12  }
 0x680   :  { %1209 = vadd.xlane.f32.xlu1 %v1202_v9 }
 0x684   :  { %1205 = vadd.xlane.f32.xlu1 %v1200_v47 }
 0x695   :  { %1239 = vperm.xlu1 %1462, %v1898_v25  }
 0x6c9   :  { %v1192_v15 = vpop.xlane.xlu0 %1191 }
 0x6cc   :  { %v1194_v10 = vpop.xlane.xlu1 %1193 }
 0x6cd   :  { %v1188_v14 = vpop.xlane.xlu0 %1187 }
 0x6d0   :  { %v1190_v13 = vpop.xlane.xlu1 %1189 }
 0x6d4   :  { %v1230_v12 = vpop.permute.xlu1 %1229 }
 0x6d8   :  { %v1235_v28 = vpop.permute.xlu1 %1234 }
 0x6db   :  { %v1208_v24 = vpop.xlane.xlu0 %1207 }
 0x6dc   :  { %v1213_v57 = vsub.f32 0.0, %v1208_v24 }
 0x6de   :  { %v1220_v51 = vsel %vm1217_vm9, %v1213_v57, 0.0 }
 0x6df   :  { %v1244_v25 = vsel %vm1216_vm10, %v1235_v28, %v1220_v51  ;;  %v1204_v17 = vpop.xlane.xlu0 %1203 }
 0x6e0   :  { %v1248_v16 = vsel %vm1215_vm11, %v1192_v15, %v1244_v25  ;;  %v1211_v18 = vsub.f32 0.0, %v1204_v17 }
 0x6e1   :  { %1253 = vst.msk [vmem:[%s2049_s7 + $0x10] sm:$0xff] %vm1250_vm12, %v1248_v16 }
 0x6e2   :  { %v1218_v19 = vsel %vm1217_vm9, %v1211_v18, 0.0 }
 0x6e7   :  { %v1225_v20 = vpop.permute.xlu0 %1224 }
 0x6e8   :  { %v1242_v21 = vsel %vm1216_vm10, %v1225_v20, %v1218_v19 }
 0x6e9   :  { %v1246_v22 = vsel %vm1215_vm11, %v1188_v14, %v1242_v21 }
 0x6ea   :  { %1251 = vst.msk [vmem:[%s2049_s7] sm:$0xff] %vm1250_vm12, %v1246_v22 }
 0x709   :  { %v1210_v23 = vpop.xlane.xlu1 %1209 }
 0x70a   :  { %v1214_v26 = vsub.f32 0.0, %v1210_v23 }
 0x70c   :  { %v1221_v31 = vsel %vm1217_vm9, %v1214_v26, 0.0 }
 0x70d   :  { %v1206_v27 = vpop.xlane.xlu1 %1205 }
 0x70e   :  { %v1212_v29 = vsub.f32 0.0, %v1206_v27 }
 0x710   :  { %v1219_v30 = vsel %vm1217_vm9, %v1212_v29, 0.0 }
 0x711   :  { %v1243_v32 = vsel %vm1216_vm10, %v1230_v12, %v1219_v30  ;;  %v1240_v33 = vpop.permute.xlu1 %1239 }
 0x712   :  { %v1247_v34 = vsel %vm1215_vm11, %v1190_v13, %v1243_v32  ;;  %v1245_v35 = vsel %vm1216_vm10, %v1240_v33, %v1221_v31 }
 0x713   :  { %1252 = vst.msk [vmem:[%s2049_s7 + $0x8] sm:$0xff] %vm1250_vm12, %v1247_v34  ;;  %v1249_v36 = vsel %vm1215_vm11, %v1194_v10, %v1245_v35 }
 0x714   :  { %1254 = vst.msk [vmem:[%s2049_s7 + $0x18] sm:$0xff] %vm1250_vm12, %v1249_v36 }
 0x715   :  { %1259 = vsyncpa [#allocation3], 1 }
 0x716   :  { %1260 = vsyncpa [#allocation5], 1 }

</bundles_post_ra>
